<compile_context>
chip_gen: v5e
topology: v5e:2x2
jax: 0.10.0
libtpu: 0.0.40
codegen_flags: <defaults>
</compile_context>

<pallas_src>
import jax
import jax.numpy as jnp
from jax.experimental import pallas as pl
from jax.experimental.pallas import tpu as pltpu

# ----------------------------- model dims ----------------------------------
B = 2        # batch
L = 8        # sequence length
D_MODEL = 32
D_INNER = 64
N_HEAD = 4
D_K = 8
D_V = 8
HK = N_HEAD * D_K          # 32
LN_EPS = 1e-6
LEAKY_SLOPE = 0.01         # F.leaky_relu default negative_slope


def _layer_norm(x, gamma, beta):
    # PyTorch LayerNorm: biased variance, eps inside sqrt.
    mean = jnp.mean(x, axis=-1, keepdims=True)
    var = jnp.mean((x - mean) ** 2, axis=-1, keepdims=True)
    xn = (x - mean) * jax.lax.rsqrt(var + LN_EPS)
    return xn * gamma + beta


# ------------------------------- kernel -------------------------------------
def _encoder_layer_kernel(x_ref, w_ref, out_ref):
    # TODO(synk): slf_attn_mask path (masked_fill with -1e9) not implemented;
    # this kernel covers the mask=None forward used in __main__.
    x = x_ref[...]                                       # (B*L, D_MODEL) = (16, 32)

    # -------- static slices of the packed weight slab (free) --------
    w_qk  = w_ref[0:32, 0:64]       # [Q/sqrt(dk) | K]            (32, 64)
    w1    = w_ref[0:32, 64:128]     # FFN first linear            (32, 64)
    w_vfc = w_ref[32:64, :]         # fused per-head V @ fc       (32, 128)
    w2    = w_ref[64:128, 0:32]     # FFN second linear           (64, 32)
    b1    = w_ref[64:65, 32:96]     # (1, 64)
    b2    = w_ref[65:66, 32:64]     # (1, 32)
    g1    = w_ref[66:67, 32:64]
    be1   = w_ref[67:68, 32:64]
    g2    = w_ref[68:69, 32:64]
    be2   = w_ref[69:70, 32:64]

    # -------- fused projections (two MXU pushes for all heads/batches) -----
    qk  = jnp.dot(x, w_qk,  preferred_element_type=jnp.float32)   # (16, 64)
    vfc = jnp.dot(x, w_vfc, preferred_element_type=jnp.float32)   # (16, 128)

    attn_rows = []
    y_parts = []
    for b in range(B):                                   # static unroll (B=2)
        r0 = b * L
        y_b = x[r0:r0 + L, :]                            # residual (8, 32)
        attn_heads = []
        for h in range(N_HEAD):                          # static unroll (H=4)
            qh = qk[r0:r0 + L, h * D_K:(h + 1) * D_K]            # (8, 8), pre-scaled
            kh = qk[r0:r0 + L, HK + h * D_K:HK + (h + 1) * D_K]  # (8, 8)
            s = jax.lax.dot_general(qh, kh, (((1,), (1,)), ((), ())),
                                    preferred_element_type=jnp.float32)  # (8, 8)
            # numerically-stable softmax (exact divide; attn is an output)
            m = jnp.max(s, axis=-1, keepdims=True)
            p = jnp.exp(s - m)
            a = p / jnp.sum(p, axis=-1, keepdims=True)           # (8, 8)
            # fused V*fc projection for this head, already in d_model space
            vh = vfc[r0:r0 + L, h * D_MODEL:(h + 1) * D_MODEL]   # (8, 32)
            y_b = y_b + jnp.dot(a, vh, preferred_element_type=jnp.float32)
            attn_heads.append(a)
        attn_rows.append(jnp.concatenate(attn_heads, axis=1))    # (8, H*L) = (8, 32)
        y_parts.append(y_b)

    y = jnp.concatenate(y_parts, axis=0)                 # (16, 32) attn out + residual
    attn_grid = jnp.concatenate(attn_rows, axis=0)       # (16, 32): [b*L+q, h*L+k]

    # attention-block LayerNorm
    y = _layer_norm(y, g1, be1)

    # position-wise feed forward + residual + LayerNorm
    hh = jnp.dot(y, w1, preferred_element_type=jnp.float32) + b1
    hh = jnp.where(hh >= 0, hh, LEAKY_SLOPE * hh)        # leaky_relu
    f = jnp.dot(hh, w2, preferred_element_type=jnp.float32) + b2 + y
    f = _layer_norm(f, g2, be2)                          # (16, 32)

    # single merged output: rows 0:16 enc_output, rows 16:32 attention grid
    out_ref[...] = jnp.concatenate([f, attn_grid], axis=0)      # (32, 32)


# ------------------------------ wrapper --------------------------------------
def encoder_layer(x, w_packed):
    """x: (B, L, D_MODEL) f32.  w_packed: (128,128) slab from pack_params().

    Returns (enc_output (B, L, D_MODEL), attn (B, N_HEAD, L, L))."""
    b, l, d = x.shape
    assert (b, l, d) == (B, L, D_MODEL)
    x2d = x.reshape(B * L, D_MODEL)

    vmem_spec = pl.BlockSpec(memory_space=pltpu.MemorySpace.VMEM)

    out = pl.pallas_call(
        _encoder_layer_kernel,
        out_shape=jax.ShapeDtypeStruct((2 * B * L, D_MODEL), jnp.float32),
        in_specs=[vmem_spec, vmem_spec],
        out_specs=vmem_spec,
    )(x2d, w_packed)

    enc = out[0:B * L].reshape(B, L, D_MODEL)
    attn_grid = out[B * L:]                              # (B*L, N_HEAD*L)
    attn = attn_grid.reshape(B, L, N_HEAD, L).transpose(0, 2, 1, 3)
    return enc, attn


# --------------------------- parameter init ---------------------------------
def init_params(key):
    ks = jax.random.split(key, 8)
    scale = 0.1
    params = {
        # linear weights stored as (in, out) so the kernel computes x @ W
        'wq': scale * jax.random.normal(ks[0], (D_MODEL, N_HEAD * D_K), jnp.float32),
        'wk': scale * jax.random.normal(ks[1], (D_MODEL, N_HEAD * D_K), jnp.float32),
        'wv': scale * jax.random.normal(ks[2], (D_MODEL, N_HEAD * D_V), jnp.float32),
        'wfc': scale * jax.random.normal(ks[3], (N_HEAD * D_V, D_MODEL), jnp.float32),
        'w1': scale * jax.random.normal(ks[4], (D_MODEL, D_INNER), jnp.float32),
        'b1': scale * jax.random.normal(ks[5], (1, D_INNER), jnp.float32),
        'w2': scale * jax.random.normal(ks[6], (D_INNER, D_MODEL), jnp.float32),
        'b2': scale * jax.random.normal(ks[7], (1, D_MODEL), jnp.float32),
        # layer norm affine params
        'g1': jnp.ones((1, D_MODEL), jnp.float32),
        'be1': jnp.zeros((1, D_MODEL), jnp.float32),
        'g2': jnp.ones((1, D_MODEL), jnp.float32),
        'be2': jnp.zeros((1, D_MODEL), jnp.float32),
    }
    return params


def pack_params(p):
    """One-time packing into a single lane-dense (128, 128) f32 weight slab.

    rows  0: 32  lanes 0:32  = W_q / sqrt(d_k)
                 lanes 32:64 = W_k
                 lanes 64:128= W_1 (FFN)
    rows 32: 64  lanes 0:128 = per-head fused W_v[:,h] @ W_fc[h,:]  (32 lanes/head)
    rows 64:128  lanes 0:32  = W_2 (FFN)
    rows 64: 70  lanes 32:96 = b1 / b2 / g1 / be1 / g2 / be2 (one per row)
    """
    temperature = D_K ** 0.5
    top = jnp.concatenate([p['wq'] / temperature, p['wk'], p['w1']], axis=1)  # (32,128)

    vfc_blocks = [p['wv'][:, h * D_V:(h + 1) * D_V] @ p['wfc'][h * D_V:(h + 1) * D_V, :]
                  for h in range(N_HEAD)]                                     # 4 x (32,32)
    mid = jnp.concatenate(vfc_blocks, axis=1)                                 # (32,128)

    bottom = jnp.zeros((64, 128), jnp.float32)
    bottom = bottom.at[:, 0:32].set(p['w2'])
    bottom = bottom.at[0, 32:96].set(p['b1'][0])
    bottom = bottom.at[1, 32:64].set(p['b2'][0])
    bottom = bottom.at[2, 32:64].set(p['g1'][0])
    bottom = bottom.at[3, 32:64].set(p['be1'][0])
    bottom = bottom.at[4, 32:64].set(p['g2'][0])
    bottom = bottom.at[5, 32:64].set(p['be2'][0])

    return jnp.concatenate([top, mid, bottom], axis=0)                        # (128,128)


# ------------------------- pure-JAX reference --------------------------------
def ref_encoder_layer(x, p):
    q = (x @ p['wq']).reshape(B, L, N_HEAD, D_K).transpose(0, 2, 1, 3)
    k = (x @ p['wk']).reshape(B, L, N_HEAD, D_K).transpose(0, 2, 1, 3)
    v = (x @ p['wv']).reshape(B, L, N_HEAD, D_V).transpose(0, 2, 1, 3)
    scores = jnp.einsum('bhqd,bhkd->bhqk', q / (D_K ** 0.5), k)
    attn = jax.nn.softmax(scores, axis=-1)
    o = jnp.einsum('bhqk,bhkd->bhqd', attn, v)
    o = o.transpose(0, 2, 1, 3).reshape(B, L, N_HEAD * D_V)
    y = o @ p['wfc'] + x
    y = _layer_norm(y, p['g1'], p['be1'])
    h = y @ p['w1'] + p['b1']
    h = jnp.where(h >= 0, h, LEAKY_SLOPE * h)
    f = h @ p['w2'] + p['b2'] + y
    f = _layer_norm(f, p['g2'], p['be2'])
    return f, attn


if __name__ == "__main__":
    key = jax.random.PRNGKey(0)
    kx, kp = jax.random.split(key)
    x = jax.random.normal(kx, (B, L, D_MODEL), jnp.float32)
    params = init_params(kp)
    w_packed = pack_params(params)

    enc_out, attn = encoder_layer(x, w_packed)
    enc_out = jax.block_until_ready(enc_out)
    attn = jax.block_until_ready(attn)

    ref_out, ref_attn = ref_encoder_layer(x, params)
    assert enc_out.shape == (B, L, D_MODEL)
    assert attn.shape == (B, N_HEAD, L, L)
    assert jnp.allclose(enc_out, ref_out, atol=2e-2, rtol=2e-2)
    assert jnp.allclose(attn, ref_attn, atol=2e-2, rtol=2e-2)

    print("KERNEL_OK")
</pallas_src>

<mosaic_0001>
module attributes {stable_mosaic.version = 11 : i64} {
  func.func @_encoder_layer_kernel(%arg0: memref<16x32xf32, #tpu.memory_space<vmem>>, %arg1: memref<128x128xf32, #tpu.memory_space<vmem>>, %arg2: memref<32x32xf32, #tpu.memory_space<vmem>>) attributes {dimension_semantics = [], scalar_prefetch = 0 : i64, scratch_operands = 0 : i64, tpu.core_type = #tpu.core_type<tc>} {
    %c0 = arith.constant 0 : index
    %c0_0 = arith.constant 0 : index
    %0 = vector.load %arg0[%c0, %c0_0] : memref<16x32xf32, #tpu.memory_space<vmem>>, vector<16x32xf32>
    %c0_1 = arith.constant 0 : index
    %c0_2 = arith.constant 0 : index
    %1 = vector.load %arg1[%c0_1, %c0_2] : memref<128x128xf32, #tpu.memory_space<vmem>>, vector<32x64xf32>
    %c0_3 = arith.constant 0 : index
    %c64 = arith.constant 64 : index
    %2 = vector.load %arg1[%c0_3, %c64] : memref<128x128xf32, #tpu.memory_space<vmem>>, vector<32x64xf32>
    %c32 = arith.constant 32 : index
    %c0_4 = arith.constant 0 : index
    %3 = vector.load %arg1[%c32, %c0_4] : memref<128x128xf32, #tpu.memory_space<vmem>>, vector<32x128xf32>
    %c64_5 = arith.constant 64 : index
    %c0_6 = arith.constant 0 : index
    %4 = vector.load %arg1[%c64_5, %c0_6] : memref<128x128xf32, #tpu.memory_space<vmem>>, vector<64x32xf32>
    %c64_7 = arith.constant 64 : index
    %c32_8 = arith.constant 32 : index
    %5 = vector.load %arg1[%c64_7, %c32_8] : memref<128x128xf32, #tpu.memory_space<vmem>>, vector<1x64xf32>
    %c65 = arith.constant 65 : index
    %c32_9 = arith.constant 32 : index
    %6 = vector.load %arg1[%c65, %c32_9] : memref<128x128xf32, #tpu.memory_space<vmem>>, vector<1x32xf32>
    %c66 = arith.constant 66 : index
    %c32_10 = arith.constant 32 : index
    %7 = vector.load %arg1[%c66, %c32_10] : memref<128x128xf32, #tpu.memory_space<vmem>>, vector<1x32xf32>
    %c67 = arith.constant 67 : index
    %c32_11 = arith.constant 32 : index
    %8 = vector.load %arg1[%c67, %c32_11] : memref<128x128xf32, #tpu.memory_space<vmem>>, vector<1x32xf32>
    %c68 = arith.constant 68 : index
    %c32_12 = arith.constant 32 : index
    %9 = vector.load %arg1[%c68, %c32_12] : memref<128x128xf32, #tpu.memory_space<vmem>>, vector<1x32xf32>
    %c69 = arith.constant 69 : index
    %c32_13 = arith.constant 32 : index
    %10 = vector.load %arg1[%c69, %c32_13] : memref<128x128xf32, #tpu.memory_space<vmem>>, vector<1x32xf32>
    %cst = arith.constant dense<0.000000e+00> : vector<16x64xf32>
    %11 = tpu.matmul %0, %1, %cst {dimension_numbers = #tpu.dot_dimension_numbers<[1], [0], [0], [1], [0, 0, 1, 1], [], []>} : vector<16x32xf32>, vector<32x64xf32>, vector<16x64xf32> -> vector<16x64xf32>
    %cst_14 = arith.constant dense<0.000000e+00> : vector<16x128xf32>
    %12 = tpu.matmul %0, %3, %cst_14 {dimension_numbers = #tpu.dot_dimension_numbers<[1], [0], [0], [1], [0, 0, 1, 1], [], []>} : vector<16x32xf32>, vector<32x128xf32>, vector<16x128xf32> -> vector<16x128xf32>
    %13 = vector.extract_strided_slice %0 {offsets = [0, 0], sizes = [8, 32], strides = [1, 1]} : vector<16x32xf32> to vector<8x32xf32>
    %14 = vector.extract_strided_slice %11 {offsets = [0, 0], sizes = [8, 8], strides = [1, 1]} : vector<16x64xf32> to vector<8x8xf32>
    %15 = vector.extract_strided_slice %11 {offsets = [0, 32], sizes = [8, 8], strides = [1, 1]} : vector<16x64xf32> to vector<8x8xf32>
    %cst_15 = arith.constant dense<0.000000e+00> : vector<8x8xf32>
    %16 = tpu.matmul %14, %15, %cst_15 {dimension_numbers = #tpu.dot_dimension_numbers<[1], [1], [0], [0], [0, 0, 1, 0], [], []>} : vector<8x8xf32>, vector<8x8xf32>, vector<8x8xf32> -> vector<8x8xf32>
    %cst_16 = arith.constant dense<0xFF800000> : vector<8xf32>
    %17 = vector.multi_reduction <maximumf>, %16, %cst_16 [1] : vector<8x8xf32> to vector<8xf32>
    %18 = vector.shape_cast %17 : vector<8xf32> to vector<8x1xf32>
    %19 = vector.broadcast %18 : vector<8x1xf32> to vector<8x8xf32>
    %20 = arith.subf %16, %19 : vector<8x8xf32>
    %21 = math.exp %20 : vector<8x8xf32>
    %cst_17 = arith.constant dense<0.000000e+00> : vector<8xf32>
    %22 = vector.multi_reduction <add>, %21, %cst_17 [1] : vector<8x8xf32> to vector<8xf32>
    %23 = vector.shape_cast %22 : vector<8xf32> to vector<8x1xf32>
    %24 = vector.broadcast %23 : vector<8x1xf32> to vector<8x8xf32>
    %25 = arith.divf %21, %24 : vector<8x8xf32>
    %26 = vector.extract_strided_slice %12 {offsets = [0, 0], sizes = [8, 32], strides = [1, 1]} : vector<16x128xf32> to vector<8x32xf32>
    %cst_18 = arith.constant dense<0.000000e+00> : vector<8x32xf32>
    %27 = tpu.matmul %25, %26, %cst_18 {dimension_numbers = #tpu.dot_dimension_numbers<[1], [0], [0], [1], [0, 0, 1, 1], [], []>} : vector<8x8xf32>, vector<8x32xf32>, vector<8x32xf32> -> vector<8x32xf32>
    %28 = arith.addf %13, %27 : vector<8x32xf32>
    %29 = vector.extract_strided_slice %11 {offsets = [0, 8], sizes = [8, 8], strides = [1, 1]} : vector<16x64xf32> to vector<8x8xf32>
    %30 = vector.extract_strided_slice %11 {offsets = [0, 40], sizes = [8, 8], strides = [1, 1]} : vector<16x64xf32> to vector<8x8xf32>
    %cst_19 = arith.constant dense<0.000000e+00> : vector<8x8xf32>
    %31 = tpu.matmul %29, %30, %cst_19 {dimension_numbers = #tpu.dot_dimension_numbers<[1], [1], [0], [0], [0, 0, 1, 0], [], []>} : vector<8x8xf32>, vector<8x8xf32>, vector<8x8xf32> -> vector<8x8xf32>
    %cst_20 = arith.constant dense<0xFF800000> : vector<8xf32>
    %32 = vector.multi_reduction <maximumf>, %31, %cst_20 [1] : vector<8x8xf32> to vector<8xf32>
    %33 = vector.shape_cast %32 : vector<8xf32> to vector<8x1xf32>
    %34 = vector.broadcast %33 : vector<8x1xf32> to vector<8x8xf32>
    %35 = arith.subf %31, %34 : vector<8x8xf32>
    %36 = math.exp %35 : vector<8x8xf32>
    %cst_21 = arith.constant dense<0.000000e+00> : vector<8xf32>
    %37 = vector.multi_reduction <add>, %36, %cst_21 [1] : vector<8x8xf32> to vector<8xf32>
    %38 = vector.shape_cast %37 : vector<8xf32> to vector<8x1xf32>
    %39 = vector.broadcast %38 : vector<8x1xf32> to vector<8x8xf32>
    %40 = arith.divf %36, %39 : vector<8x8xf32>
    %41 = vector.extract_strided_slice %12 {offsets = [0, 32], sizes = [8, 32], strides = [1, 1]} : vector<16x128xf32> to vector<8x32xf32>
    %cst_22 = arith.constant dense<0.000000e+00> : vector<8x32xf32>
    %42 = tpu.matmul %40, %41, %cst_22 {dimension_numbers = #tpu.dot_dimension_numbers<[1], [0], [0], [1], [0, 0, 1, 1], [], []>} : vector<8x8xf32>, vector<8x32xf32>, vector<8x32xf32> -> vector<8x32xf32>
    %43 = arith.addf %28, %42 : vector<8x32xf32>
    %44 = vector.extract_strided_slice %11 {offsets = [0, 16], sizes = [8, 8], strides = [1, 1]} : vector<16x64xf32> to vector<8x8xf32>
    %45 = vector.extract_strided_slice %11 {offsets = [0, 48], sizes = [8, 8], strides = [1, 1]} : vector<16x64xf32> to vector<8x8xf32>
    %cst_23 = arith.constant dense<0.000000e+00> : vector<8x8xf32>
    %46 = tpu.matmul %44, %45, %cst_23 {dimension_numbers = #tpu.dot_dimension_numbers<[1], [1], [0], [0], [0, 0, 1, 0], [], []>} : vector<8x8xf32>, vector<8x8xf32>, vector<8x8xf32> -> vector<8x8xf32>
    %cst_24 = arith.constant dense<0xFF800000> : vector<8xf32>
    %47 = vector.multi_reduction <maximumf>, %46, %cst_24 [1] : vector<8x8xf32> to vector<8xf32>
    %48 = vector.shape_cast %47 : vector<8xf32> to vector<8x1xf32>
    %49 = vector.broadcast %48 : vector<8x1xf32> to vector<8x8xf32>
    %50 = arith.subf %46, %49 : vector<8x8xf32>
    %51 = math.exp %50 : vector<8x8xf32>
    %cst_25 = arith.constant dense<0.000000e+00> : vector<8xf32>
    %52 = vector.multi_reduction <add>, %51, %cst_25 [1] : vector<8x8xf32> to vector<8xf32>
    %53 = vector.shape_cast %52 : vector<8xf32> to vector<8x1xf32>
    %54 = vector.broadcast %53 : vector<8x1xf32> to vector<8x8xf32>
    %55 = arith.divf %51, %54 : vector<8x8xf32>
    %56 = vector.extract_strided_slice %12 {offsets = [0, 64], sizes = [8, 32], strides = [1, 1]} : vector<16x128xf32> to vector<8x32xf32>
    %cst_26 = arith.constant dense<0.000000e+00> : vector<8x32xf32>
    %57 = tpu.matmul %55, %56, %cst_26 {dimension_numbers = #tpu.dot_dimension_numbers<[1], [0], [0], [1], [0, 0, 1, 1], [], []>} : vector<8x8xf32>, vector<8x32xf32>, vector<8x32xf32> -> vector<8x32xf32>
    %58 = arith.addf %43, %57 : vector<8x32xf32>
    %59 = vector.extract_strided_slice %11 {offsets = [0, 24], sizes = [8, 8], strides = [1, 1]} : vector<16x64xf32> to vector<8x8xf32>
    %60 = vector.extract_strided_slice %11 {offsets = [0, 56], sizes = [8, 8], strides = [1, 1]} : vector<16x64xf32> to vector<8x8xf32>
    %cst_27 = arith.constant dense<0.000000e+00> : vector<8x8xf32>
    %61 = tpu.matmul %59, %60, %cst_27 {dimension_numbers = #tpu.dot_dimension_numbers<[1], [1], [0], [0], [0, 0, 1, 0], [], []>} : vector<8x8xf32>, vector<8x8xf32>, vector<8x8xf32> -> vector<8x8xf32>
    %cst_28 = arith.constant dense<0xFF800000> : vector<8xf32>
    %62 = vector.multi_reduction <maximumf>, %61, %cst_28 [1] : vector<8x8xf32> to vector<8xf32>
    %63 = vector.shape_cast %62 : vector<8xf32> to vector<8x1xf32>
    %64 = vector.broadcast %63 : vector<8x1xf32> to vector<8x8xf32>
    %65 = arith.subf %61, %64 : vector<8x8xf32>
    %66 = math.exp %65 : vector<8x8xf32>
    %cst_29 = arith.constant dense<0.000000e+00> : vector<8xf32>
    %67 = vector.multi_reduction <add>, %66, %cst_29 [1] : vector<8x8xf32> to vector<8xf32>
    %68 = vector.shape_cast %67 : vector<8xf32> to vector<8x1xf32>
    %69 = vector.broadcast %68 : vector<8x1xf32> to vector<8x8xf32>
    %70 = arith.divf %66, %69 : vector<8x8xf32>
    %71 = vector.extract_strided_slice %12 {offsets = [0, 96], sizes = [8, 32], strides = [1, 1]} : vector<16x128xf32> to vector<8x32xf32>
    %cst_30 = arith.constant dense<0.000000e+00> : vector<8x32xf32>
    %72 = tpu.matmul %70, %71, %cst_30 {dimension_numbers = #tpu.dot_dimension_numbers<[1], [0], [0], [1], [0, 0, 1, 1], [], []>} : vector<8x8xf32>, vector<8x32xf32>, vector<8x32xf32> -> vector<8x32xf32>
    %73 = arith.addf %58, %72 : vector<8x32xf32>
    %74 = tpu.concatenate %25, %40, %55, %70 in 1 : vector<8x8xf32>, vector<8x8xf32>, vector<8x8xf32>, vector<8x8xf32> -> vector<8x32xf32>
    %75 = vector.extract_strided_slice %0 {offsets = [8, 0], sizes = [8, 32], strides = [1, 1]} : vector<16x32xf32> to vector<8x32xf32>
    %76 = vector.extract_strided_slice %11 {offsets = [8, 0], sizes = [8, 8], strides = [1, 1]} : vector<16x64xf32> to vector<8x8xf32>
    %77 = vector.extract_strided_slice %11 {offsets = [8, 32], sizes = [8, 8], strides = [1, 1]} : vector<16x64xf32> to vector<8x8xf32>
    %cst_31 = arith.constant dense<0.000000e+00> : vector<8x8xf32>
    %78 = tpu.matmul %76, %77, %cst_31 {dimension_numbers = #tpu.dot_dimension_numbers<[1], [1], [0], [0], [0, 0, 1, 0], [], []>} : vector<8x8xf32>, vector<8x8xf32>, vector<8x8xf32> -> vector<8x8xf32>
    %cst_32 = arith.constant dense<0xFF800000> : vector<8xf32>
    %79 = vector.multi_reduction <maximumf>, %78, %cst_32 [1] : vector<8x8xf32> to vector<8xf32>
    %80 = vector.shape_cast %79 : vector<8xf32> to vector<8x1xf32>
    %81 = vector.broadcast %80 : vector<8x1xf32> to vector<8x8xf32>
    %82 = arith.subf %78, %81 : vector<8x8xf32>
    %83 = math.exp %82 : vector<8x8xf32>
    %cst_33 = arith.constant dense<0.000000e+00> : vector<8xf32>
    %84 = vector.multi_reduction <add>, %83, %cst_33 [1] : vector<8x8xf32> to vector<8xf32>
    %85 = vector.shape_cast %84 : vector<8xf32> to vector<8x1xf32>
    %86 = vector.broadcast %85 : vector<8x1xf32> to vector<8x8xf32>
    %87 = arith.divf %83, %86 : vector<8x8xf32>
    %88 = vector.extract_strided_slice %12 {offsets = [8, 0], sizes = [8, 32], strides = [1, 1]} : vector<16x128xf32> to vector<8x32xf32>
    %cst_34 = arith.constant dense<0.000000e+00> : vector<8x32xf32>
    %89 = tpu.matmul %87, %88, %cst_34 {dimension_numbers = #tpu.dot_dimension_numbers<[1], [0], [0], [1], [0, 0, 1, 1], [], []>} : vector<8x8xf32>, vector<8x32xf32>, vector<8x32xf32> -> vector<8x32xf32>
    %90 = arith.addf %75, %89 : vector<8x32xf32>
    %91 = vector.extract_strided_slice %11 {offsets = [8, 8], sizes = [8, 8], strides = [1, 1]} : vector<16x64xf32> to vector<8x8xf32>
    %92 = vector.extract_strided_slice %11 {offsets = [8, 40], sizes = [8, 8], strides = [1, 1]} : vector<16x64xf32> to vector<8x8xf32>
    %cst_35 = arith.constant dense<0.000000e+00> : vector<8x8xf32>
    %93 = tpu.matmul %91, %92, %cst_35 {dimension_numbers = #tpu.dot_dimension_numbers<[1], [1], [0], [0], [0, 0, 1, 0], [], []>} : vector<8x8xf32>, vector<8x8xf32>, vector<8x8xf32> -> vector<8x8xf32>
    %cst_36 = arith.constant dense<0xFF800000> : vector<8xf32>
    %94 = vector.multi_reduction <maximumf>, %93, %cst_36 [1] : vector<8x8xf32> to vector<8xf32>
    %95 = vector.shape_cast %94 : vector<8xf32> to vector<8x1xf32>
    %96 = vector.broadcast %95 : vector<8x1xf32> to vector<8x8xf32>
    %97 = arith.subf %93, %96 : vector<8x8xf32>
    %98 = math.exp %97 : vector<8x8xf32>
    %cst_37 = arith.constant dense<0.000000e+00> : vector<8xf32>
    %99 = vector.multi_reduction <add>, %98, %cst_37 [1] : vector<8x8xf32> to vector<8xf32>
    %100 = vector.shape_cast %99 : vector<8xf32> to vector<8x1xf32>
    %101 = vector.broadcast %100 : vector<8x1xf32> to vector<8x8xf32>
    %102 = arith.divf %98, %101 : vector<8x8xf32>
    %103 = vector.extract_strided_slice %12 {offsets = [8, 32], sizes = [8, 32], strides = [1, 1]} : vector<16x128xf32> to vector<8x32xf32>
    %cst_38 = arith.constant dense<0.000000e+00> : vector<8x32xf32>
    %104 = tpu.matmul %102, %103, %cst_38 {dimension_numbers = #tpu.dot_dimension_numbers<[1], [0], [0], [1], [0, 0, 1, 1], [], []>} : vector<8x8xf32>, vector<8x32xf32>, vector<8x32xf32> -> vector<8x32xf32>
    %105 = arith.addf %90, %104 : vector<8x32xf32>
    %106 = vector.extract_strided_slice %11 {offsets = [8, 16], sizes = [8, 8], strides = [1, 1]} : vector<16x64xf32> to vector<8x8xf32>
    %107 = vector.extract_strided_slice %11 {offsets = [8, 48], sizes = [8, 8], strides = [1, 1]} : vector<16x64xf32> to vector<8x8xf32>
    %cst_39 = arith.constant dense<0.000000e+00> : vector<8x8xf32>
    %108 = tpu.matmul %106, %107, %cst_39 {dimension_numbers = #tpu.dot_dimension_numbers<[1], [1], [0], [0], [0, 0, 1, 0], [], []>} : vector<8x8xf32>, vector<8x8xf32>, vector<8x8xf32> -> vector<8x8xf32>
    %cst_40 = arith.constant dense<0xFF800000> : vector<8xf32>
    %109 = vector.multi_reduction <maximumf>, %108, %cst_40 [1] : vector<8x8xf32> to vector<8xf32>
    %110 = vector.shape_cast %109 : vector<8xf32> to vector<8x1xf32>
    %111 = vector.broadcast %110 : vector<8x1xf32> to vector<8x8xf32>
    %112 = arith.subf %108, %111 : vector<8x8xf32>
    %113 = math.exp %112 : vector<8x8xf32>
    %cst_41 = arith.constant dense<0.000000e+00> : vector<8xf32>
    %114 = vector.multi_reduction <add>, %113, %cst_41 [1] : vector<8x8xf32> to vector<8xf32>
    %115 = vector.shape_cast %114 : vector<8xf32> to vector<8x1xf32>
    %116 = vector.broadcast %115 : vector<8x1xf32> to vector<8x8xf32>
    %117 = arith.divf %113, %116 : vector<8x8xf32>
    %118 = vector.extract_strided_slice %12 {offsets = [8, 64], sizes = [8, 32], strides = [1, 1]} : vector<16x128xf32> to vector<8x32xf32>
    %cst_42 = arith.constant dense<0.000000e+00> : vector<8x32xf32>
    %119 = tpu.matmul %117, %118, %cst_42 {dimension_numbers = #tpu.dot_dimension_numbers<[1], [0], [0], [1], [0, 0, 1, 1], [], []>} : vector<8x8xf32>, vector<8x32xf32>, vector<8x32xf32> -> vector<8x32xf32>
    %120 = arith.addf %105, %119 : vector<8x32xf32>
    %121 = vector.extract_strided_slice %11 {offsets = [8, 24], sizes = [8, 8], strides = [1, 1]} : vector<16x64xf32> to vector<8x8xf32>
    %122 = vector.extract_strided_slice %11 {offsets = [8, 56], sizes = [8, 8], strides = [1, 1]} : vector<16x64xf32> to vector<8x8xf32>
    %cst_43 = arith.constant dense<0.000000e+00> : vector<8x8xf32>
    %123 = tpu.matmul %121, %122, %cst_43 {dimension_numbers = #tpu.dot_dimension_numbers<[1], [1], [0], [0], [0, 0, 1, 0], [], []>} : vector<8x8xf32>, vector<8x8xf32>, vector<8x8xf32> -> vector<8x8xf32>
    %cst_44 = arith.constant dense<0xFF800000> : vector<8xf32>
    %124 = vector.multi_reduction <maximumf>, %123, %cst_44 [1] : vector<8x8xf32> to vector<8xf32>
    %125 = vector.shape_cast %124 : vector<8xf32> to vector<8x1xf32>
    %126 = vector.broadcast %125 : vector<8x1xf32> to vector<8x8xf32>
    %127 = arith.subf %123, %126 : vector<8x8xf32>
    %128 = math.exp %127 : vector<8x8xf32>
    %cst_45 = arith.constant dense<0.000000e+00> : vector<8xf32>
    %129 = vector.multi_reduction <add>, %128, %cst_45 [1] : vector<8x8xf32> to vector<8xf32>
    %130 = vector.shape_cast %129 : vector<8xf32> to vector<8x1xf32>
    %131 = vector.broadcast %130 : vector<8x1xf32> to vector<8x8xf32>
    %132 = arith.divf %128, %131 : vector<8x8xf32>
    %133 = vector.extract_strided_slice %12 {offsets = [8, 96], sizes = [8, 32], strides = [1, 1]} : vector<16x128xf32> to vector<8x32xf32>
    %cst_46 = arith.constant dense<0.000000e+00> : vector<8x32xf32>
    %134 = tpu.matmul %132, %133, %cst_46 {dimension_numbers = #tpu.dot_dimension_numbers<[1], [0], [0], [1], [0, 0, 1, 1], [], []>} : vector<8x8xf32>, vector<8x32xf32>, vector<8x32xf32> -> vector<8x32xf32>
    %135 = arith.addf %120, %134 : vector<8x32xf32>
    %136 = tpu.concatenate %87, %102, %117, %132 in 1 : vector<8x8xf32>, vector<8x8xf32>, vector<8x8xf32>, vector<8x8xf32> -> vector<8x32xf32>
    %137 = tpu.concatenate %73, %135 in 0 : vector<8x32xf32>, vector<8x32xf32> -> vector<16x32xf32>
    %138 = tpu.concatenate %74, %136 in 0 : vector<8x32xf32>, vector<8x32xf32> -> vector<16x32xf32>
    %cst_47 = arith.constant dense<0.000000e+00> : vector<16xf32>
    %139 = vector.multi_reduction <add>, %137, %cst_47 [1] : vector<16x32xf32> to vector<16xf32>
    %140 = vector.shape_cast %139 : vector<16xf32> to vector<16x1xf32>
    %cst_48 = arith.constant 3.200000e+01 : f32
    %141 = vector.broadcast %cst_48 : f32 to vector<16x1xf32>
    %142 = arith.divf %140, %141 : vector<16x1xf32>
    %143 = vector.broadcast %142 : vector<16x1xf32> to vector<16x32xf32>
    %144 = arith.subf %137, %143 : vector<16x32xf32>
    %145 = arith.mulf %144, %144 : vector<16x32xf32>
    %cst_49 = arith.constant dense<0.000000e+00> : vector<16xf32>
    %146 = vector.multi_reduction <add>, %145, %cst_49 [1] : vector<16x32xf32> to vector<16xf32>
    %147 = vector.shape_cast %146 : vector<16xf32> to vector<16x1xf32>
    %cst_50 = arith.constant 3.200000e+01 : f32
    %148 = vector.broadcast %cst_50 : f32 to vector<16x1xf32>
    %149 = arith.divf %147, %148 : vector<16x1xf32>
    %150 = vector.broadcast %142 : vector<16x1xf32> to vector<16x32xf32>
    %151 = arith.subf %137, %150 : vector<16x32xf32>
    %cst_51 = arith.constant 9.99999997E-7 : f32
    %152 = vector.broadcast %cst_51 : f32 to vector<16x1xf32>
    %153 = arith.addf %149, %152 : vector<16x1xf32>
    %154 = math.rsqrt %153 : vector<16x1xf32>
    %155 = vector.broadcast %154 : vector<16x1xf32> to vector<16x32xf32>
    %156 = arith.mulf %151, %155 : vector<16x32xf32>
    %157 = vector.broadcast %7 : vector<1x32xf32> to vector<16x32xf32>
    %158 = arith.mulf %156, %157 : vector<16x32xf32>
    %159 = vector.broadcast %8 : vector<1x32xf32> to vector<16x32xf32>
    %160 = arith.addf %158, %159 : vector<16x32xf32>
    %cst_52 = arith.constant dense<0.000000e+00> : vector<16x64xf32>
    %161 = tpu.matmul %160, %2, %cst_52 {dimension_numbers = #tpu.dot_dimension_numbers<[1], [0], [0], [1], [0, 0, 1, 1], [], []>} : vector<16x32xf32>, vector<32x64xf32>, vector<16x64xf32> -> vector<16x64xf32>
    %162 = vector.broadcast %5 : vector<1x64xf32> to vector<16x64xf32>
    %163 = arith.addf %161, %162 : vector<16x64xf32>
    %cst_53 = arith.constant 0.000000e+00 : f32
    %164 = vector.broadcast %cst_53 : f32 to vector<16x64xf32>
    %165 = arith.cmpf oge, %163, %164 : vector<16x64xf32>
    %cst_54 = arith.constant 0.00999999977 : f32
    %166 = vector.broadcast %cst_54 : f32 to vector<16x64xf32>
    %167 = arith.mulf %166, %163 : vector<16x64xf32>
    %168 = arith.select %165, %163, %167 : vector<16x64xi1>, vector<16x64xf32>
    %cst_55 = arith.constant dense<0.000000e+00> : vector<16x32xf32>
    %169 = tpu.matmul %168, %4, %cst_55 {dimension_numbers = #tpu.dot_dimension_numbers<[1], [0], [0], [1], [0, 0, 1, 1], [], []>} : vector<16x64xf32>, vector<64x32xf32>, vector<16x32xf32> -> vector<16x32xf32>
    %170 = vector.broadcast %6 : vector<1x32xf32> to vector<16x32xf32>
    %171 = arith.addf %169, %170 : vector<16x32xf32>
    %172 = arith.addf %171, %160 : vector<16x32xf32>
    %cst_56 = arith.constant dense<0.000000e+00> : vector<16xf32>
    %173 = vector.multi_reduction <add>, %172, %cst_56 [1] : vector<16x32xf32> to vector<16xf32>
    %174 = vector.shape_cast %173 : vector<16xf32> to vector<16x1xf32>
    %cst_57 = arith.constant 3.200000e+01 : f32
    %175 = vector.broadcast %cst_57 : f32 to vector<16x1xf32>
    %176 = arith.divf %174, %175 : vector<16x1xf32>
    %177 = vector.broadcast %176 : vector<16x1xf32> to vector<16x32xf32>
    %178 = arith.subf %172, %177 : vector<16x32xf32>
    %179 = arith.mulf %178, %178 : vector<16x32xf32>
    %cst_58 = arith.constant dense<0.000000e+00> : vector<16xf32>
    %180 = vector.multi_reduction <add>, %179, %cst_58 [1] : vector<16x32xf32> to vector<16xf32>
    %181 = vector.shape_cast %180 : vector<16xf32> to vector<16x1xf32>
    %cst_59 = arith.constant 3.200000e+01 : f32
    %182 = vector.broadcast %cst_59 : f32 to vector<16x1xf32>
    %183 = arith.divf %181, %182 : vector<16x1xf32>
    %184 = vector.broadcast %176 : vector<16x1xf32> to vector<16x32xf32>
    %185 = arith.subf %172, %184 : vector<16x32xf32>
    %cst_60 = arith.constant 9.99999997E-7 : f32
    %186 = vector.broadcast %cst_60 : f32 to vector<16x1xf32>
    %187 = arith.addf %183, %186 : vector<16x1xf32>
    %188 = math.rsqrt %187 : vector<16x1xf32>
    %189 = vector.broadcast %188 : vector<16x1xf32> to vector<16x32xf32>
    %190 = arith.mulf %185, %189 : vector<16x32xf32>
    %191 = vector.broadcast %9 : vector<1x32xf32> to vector<16x32xf32>
    %192 = arith.mulf %190, %191 : vector<16x32xf32>
    %193 = vector.broadcast %10 : vector<1x32xf32> to vector<16x32xf32>
    %194 = arith.addf %192, %193 : vector<16x32xf32>
    %195 = tpu.concatenate %194, %138 in 0 : vector<16x32xf32>, vector<16x32xf32> -> vector<32x32xf32>
    %c0_61 = arith.constant 0 : index
    %c0_62 = arith.constant 0 : index
    %196 = vector.load %arg2[%c0_61, %c0_62] : memref<32x32xf32, #tpu.memory_space<vmem>>, vector<32x32xf32>
    tpu.vector_store %arg2[%c0_61, %c0_62], %195 {strides = array<i32>} : memref<32x32xf32, #tpu.memory_space<vmem>>, vector<32x32xf32>,
    return
  }
}

</mosaic_0001>

<bundles_post_ra>
// kernel: tpu_custom_call.1
= control target key start
LH: loop header
LB: loop body
LE: loop exit
PB: predicated region body
PF: predicated region fallthrough
CT: control target
= control target key end

     0   :  { %7 = vsyncpa [#allocation3], 0  ;;  %s1502_s0 = inlined_call_operand.hbm [shape: f32[16,32], index: 0, kind: input, shape index: {}]   ;;  %s1503_s1 = inlined_call_operand.hbm [shape: f32[128,128], index: 1, kind: input, shape index: {}]   ;;  %s1504_s2 = inlined_call_operand.hbm [shape: f32[32,32], index: 2, kind: output, shape index: {}]  }
   0x1   :  { %8 = vsyncpa [#allocation6], 0 }
   0x2   :  { %9 = vsyncpa [#allocation4], 0  ;;  %s14_s11 = sshll.u32 %s1502_s0, 4  ;;  %s1199_s12 = smov [#allocation2]   ;;  %s15_s11 = int_to_ptr.hbm [resolvable:$true] %s14_s11 }
   0x3   :  { %s16_s13 = sshll.u32 %s1199_s12, 4  ;;  %s27_s16 = sshll.u32 %s1503_s1, 4  ;;  %s17_s13 = int_to_ptr.vmem [resolvable:$true] %s16_s13  ;;  %s28_s16 = int_to_ptr.hbm [resolvable:$true] %s27_s16 }
   0x4   :  { %s1200_s17 = smov 128   ;;  %s1201_s18 = smov 8  }
   0x5   :  { %22 = dma.hbm_to_vmem [thread:$0]  %s15_s11, 256, %s17_s13, [#allocation3], %s1200_s17, %s1200_s17, %s1201_s18  }
   0x6   :  { %s1202_s19 = smov [#allocation5]  }
   0x7   :  { %s29_s20 = sshll.u32 %s1202_s19, 4  ;;  %s30_s20 = int_to_ptr.vmem [resolvable:$true] %s29_s20 }
   0x8   :  { %35 = dma.hbm_to_vmem [thread:$0]  %s28_s16, 2048, %s30_s20, [#allocation6], %s1200_s17, %s1200_s17, %s1201_s18  }
   0x9   :  { %1193 = dma.done.wait [#allocation3], 256  }
   0xa   :  { %1194 = vsyncadd [#allocation3], 4294967040 }
   0xb   :  { %1195 = dma.done.wait [#allocation6], 2048  }
   0xc   :  { %1196 = vsyncadd [#allocation6], 4294965248  ;;  %v1243_v0 = vld [vmem:[#allocation5 + $0x18] sm:$0xff]  ;;  %v1245_v1 = vld [vmem:[#allocation5 + $0x10] sm:$0xff]  ;;  %vm68_vm0 = vcmask 261120   ;;  %s1203_s0 = smov 120  }
   0xd   :  { %87 = vmatpush.msra.mxu0 %v1243_v0  ;;  %v1063_v2 = vpack.i.bf16 %v1245_v1, %v1243_v0  ;;  %v1250_v3 = vld [vmem:[#allocation5 + $0x8] sm:$0xff]  ;;  %v1252_v4 = vld [vmem:[#allocation5] sm:$0xff]  ;;  %v53_v6 = vld [vmem:[#allocation5 + $0x38] sm:$0xff]  ;;  %s1204_s1 = smov 88   ;;  %s1205_s21 = smov 96   ;;  %vm124_vm1 = vcmask 64512  }
   0xe   :  { %v1068_v5 = vpack.i.bf16 %v1252_v4, %v1250_v3  ;;  %v52_v7 = vld [vmem:[#allocation5 + $0x30] sm:$0xff]  ;;  %110 = vmatpush.msra.mxu1 %v53_v6  ;;  %v51_v8 = vld [vmem:[#allocation5 + $0x28] sm:$0xff]  ;;  %v50_v10 = vld [vmem:[#allocation5 + $0x20] sm:$0xff]  ;;  %s1206_s22 = smov 80   ;;  %s1207_s23 = smov 112  }
   0xf   :  { %88 = vmatpush.msra.mxu0 %v1245_v1  ;;  %v1258_v9 = vld [vmem:[#allocation2] sm:$0xff]  ;;  %v1265_v11 = vld [vmem:[#allocation2 + $0x8] sm:$0xff]  ;;  %s1208_s24 = smov 72   ;;  %s1209_s25 = smov 104  }
  0x10   :  { %111 = vmatpush.msra.mxu1 %v52_v7  ;;  %s1210_s26 = smov 64   ;;  %s1211_s27 = smov 32  }
  0x11   :  { %89 = vmatpush.msra.mxu0 %v1250_v3  ;;  %s1212_s28 = smov 16   ;;  %s1213_s29 = smov 24  }
  0x12   :  { %112 = vmatpush.msra.mxu1 %v51_v8  ;;  %s1215_s30 = smov [#allocation7]   ;;  %s1000_s6 = sshll.u32 %s1504_s2, 4  ;;  %s1001_s6 = int_to_ptr.hbm [resolvable:$true] %s1000_s6 }
  0x13   :  { %90 = vmatpush.msra.mxu0 %v1252_v4  ;;  %s998_s3 = sshll.u32 %s1215_s30, 4  ;;  %s999_s3 = int_to_ptr.vmem [resolvable:$true] %s998_s3 }
  0x14   :  { %1014 = vmatmul.msk.f32.vlgmr.msra.gmra.mxu0 %vm68_vm0, %v1258_v9  ;;  %113 = vmatpush.msra.mxu1 %v50_v10 }
  0x15   :  { %1016 = vmatmul.msk.f32.vlgmr.msra.gmra.mxu1 %vm68_vm0, %v1258_v9 }
  0x1c   :  { %1015 = vmatmul.msk.f32.gmra.mxu0 %vm68_vm0, %v1265_v11 }
  0x1d   :  { %1017 = vmatmul.msk.f32.gmra.mxu1 %vm68_vm0, %v1265_v11 }
  0x91   :  { %v92_v12 = vpop.f32.mrf.mxu0 }
  0x92   :  { %197 = vrot.lane.b32.xlu2 %v92_v12, %s1203_s0  ;;  %199 = vrot.lane.b32.xlu1 %v92_v12, %s1204_s1  ;;  %v1281_v14 = vpop.f32.mrf.mxu1 }
  0x93   :  { %122 = vrot.lane.b32.xlu0 %v92_v12, %s1205_s21  ;;  %191 = vmatpush.msra.mxu3 %v1281_v14 }
  0x99   :  { %v1275_v13 = vpop.f32.mrf.mxu0 }
  0x9a   :  { %279 = vrot.lane.b32.xlu2 %v92_v12, %s1206_s22 }
  0xa2   :  { %277 = vrot.lane.b32.xlu2 %v92_v12, %s1207_s23 }
  0xaa   :  { %450 = vrot.lane.b32.xlu2 %v1275_v13, %s1205_s21 }
  0xb2   :  { %358 = vrot.lane.b32.xlu2 %v92_v12, %s1208_s24 }
  0xba   :  { %356 = vrot.lane.b32.xlu2 %v92_v12, %s1209_s25 }
  0xc2   :  { %526 = vrot.lane.b32.xlu2 %v1275_v13, %s1204_s1 }
  0xca   :  { %683 = vrot.lane.b32.xlu2 %v1275_v13, %s1209_s25 }
  0xec   :  { %v198_v15 = vpop.permute.xlu2 %197 }
  0xf4   :  { %v280_v16 = vpop.permute.xlu2 %279 }
  0xfc   :  { %v278_v17 = vpop.permute.xlu2 %277 }
 0x104   :  { %v200_v18 = vpop.permute.xlu1 %199  ;;  %v451_v19 = vpop.permute.xlu2 %450 }
 0x105   :  { %v123_v20 = vpop.permute.xlu0 %122  ;;  %1021 = vmatpush.xpose.msk.msrb.mxu3 %vm124_vm1, %v200_v18 }
 0x106   :  { %1018 = vmatpush.xpose.msk.msrb.mxu0 %vm124_vm1, %v123_v20 }
 0x109   :  { %1019 = vmatmul.msk.f32.vlgmr.msrb.gmra.mxu0 %vm124_vm1, %v92_v12 }
 0x10c   :  { %v359_v21 = vpop.permute.xlu2 %358 }
 0x10d   :  { %1027 = vmatpush.xpose.msk.msra.mxu0 %vm124_vm1, %v359_v21 }
 0x114   :  { %v357_v22 = vpop.permute.xlu2 %356 }
 0x115   :  { %1028 = vmatmul.msk.f32.vlgmr.msra.gmra.mxu0 %vm124_vm1, %v357_v22 }
 0x11c   :  { %v527_v25 = vpop.permute.xlu2 %526 }
 0x11d   :  { %1033 = vmatpush.xpose.msk.msrb.mxu0 %vm124_vm1, %v527_v25 }
 0x124   :  { %v684_v49 = vpop.permute.xlu2 %683 }
 0x186   :  { %v146_v23 = vpop.f32.mrf.mxu0 }
 0x187   :  { %v149_v24 = vsel %vm124_vm1, %v146_v23, -inf }
 0x188   :  { %150 = vmax.xlane.f32.xlu0 %v149_v24 }
 0x192   :  { %v381_v26 = vpop.f32.mrf.mxu0 }
 0x193   :  { %v384_v27 = vsel %vm124_vm1, %v381_v26, -inf }
 0x19c   :  { %685 = vrot.lane.b32.xlu0 %v1275_v13, %s1208_s24 }
 0x1c6   :  { %385 = vmax.xlane.f32.xlu0 %v384_v27 }
 0x1fb   :  { %v151_v28 = vpop.xlane.xlu0 %150 }
 0x1fc   :  { %v152_v29 = vsub.f32 %v146_v23, %v151_v28 }
 0x1fe   :  { %v153_v30 = vmul.f32 1.442695, %v152_v29 }
 0x200   :  { %1079 = vpow2.f32 %v153_v30 }
 0x206   :  { %v1080_v31 = vpop.eup %1079 }
 0x207   :  { %v155_v32 = vsel %vm124_vm1, %v1080_v31, 0.0 }
 0x208   :  { %156 = vadd.xlane.f32.xlu1 %v155_v32 }
 0x20e   :  { %v686_v33 = vpop.permute.xlu0 %685 }
 0x20f   :  { %1039 = vmatpush.xpose.msk.msra.mxu0 %vm124_vm1, %v686_v33 }
 0x221   :  { %606 = vrot.lane.b32.xlu1 %v1275_v13, %s1206_s22 }
 0x229   :  { %604 = vrot.lane.b32.xlu1 %v1275_v13, %s1207_s23 }
 0x231   :  { %524 = vrot.lane.b32.xlu1 %v1275_v13, %s1203_s0 }
 0x239   :  { %v386_v52 = vpop.xlane.xlu0 %385 }
 0x23a   :  { %v387_v53 = vsub.f32 %v381_v26, %v386_v52 }
 0x23c   :  { %v388_v56 = vmul.f32 1.442695, %v387_v53 }
 0x27b   :  { %v157_v34 = vpop.xlane.xlu1 %156 }
 0x27c   :  { %1081 = vrcp.f32 %v157_v34  ;;  %v169_v38 = vand.u32 2147483648, %v157_v34  ;;  %v167_v40 = vand.u32 2147483647, %v157_v34  ;;  %vm163_vm3 = vweird.f32 %v157_v34 }
 0x27d   :  { %1083 = vpow2.f32 %v388_v56 }
 0x27e   :  { %v170_v42 = vor.u32 1.1754944e-38, %v169_v38  ;;  %vm168_vm5 = vcmp.eq.f32.partialorder %v167_v40, 8.507059e+37 }
 0x282   :  { %v1082_v35 = vpop.eup %1081 }
 0x283   :  { %v159_v36 = vmul.f32 %v1082_v35, %v157_v34  ;;  %vm164_vm2 = vweird.f32 %v1082_v35  ;;  %v1320_v61 = vpop.eup %1083 }
 0x284   :  { %vm165_vm4 = vmor %vm163_vm3, %vm164_vm2  ;;  %v390_v62 = vsel %vm124_vm1, %v1320_v61, 0.0 }
 0x285   :  { %v160_v37 = vsub.f32 1.0, %v159_v36 }
 0x287   :  { %v161_v39 = vmul.f32 %v1082_v35, %v160_v37 }
 0x289   :  { %v162_v41 = vadd.f32 %v1082_v35, %v161_v39 }
 0x28b   :  { %v166_v43 = vsel %vm165_vm4, %v1082_v35, %v162_v41  ;;  %v118_v35 = vpop.f32.mrf.mxu1 }
 0x28c   :  { %v171_v44 = vsel %vm168_vm5, %v170_v42, %v166_v43 }
 0x28d   :  { %v1301_v45 = vmul.f32 %v1080_v31, %v171_v44 }
 0x28f   :  { %1020 = vmatmul.msk.f32.vlgmr.msra.gmra.mxu3 %vm124_vm1, %v1301_v45 }
 0x290   :  { %1024 = vmatpush.xpose.msk.msra.mxu3 %vm124_vm1, %v280_v16 }
 0x293   :  { %v607_v46 = vpop.permute.xlu1 %606 }
 0x297   :  { %1022 = vmatmul.msk.f32.vlgmr.msrb.gmra.mxu3 %vm124_vm1, %v198_v15 }
 0x298   :  { %1030 = vmatpush.xpose.msk.msrb.mxu3 %vm124_vm1, %v451_v19 }
 0x29b   :  { %v605_v47 = vpop.permute.xlu1 %604 }
 0x29f   :  { %1025 = vmatmul.msk.f32.vlgmr.msra.gmra.mxu3 %vm124_vm1, %v278_v17 }
 0x2a0   :  { %1036 = vmatpush.xpose.msk.msra.mxu3 %vm124_vm1, %v607_v46 }
 0x2a3   :  { %v525_v48 = vpop.permute.xlu1 %524 }
 0x2a4   :  { %1034 = vmatmul.msk.f32.vlgmr.msrb.gmra.mxu0 %vm124_vm1, %v525_v48 }
 0x2a7   :  { %1031 = vmatmul.msk.f32.vlgmr.msrb.gmra.mxu3 %vm124_vm1, %v1275_v13 }
 0x2ac   :  { %1040 = vmatmul.msk.f32.vlgmr.msra.gmra.mxu0 %vm124_vm1, %v684_v49 }
 0x2af   :  { %1037 = vmatmul.msk.f32.vlgmr.msra.gmra.mxu3 %vm124_vm1, %v605_v47 }
 0x312   :  { %v1315_v50 = vpop.f32.mrf.mxu3 }
 0x31a   :  { %v222_v51 = vpop.f32.mrf.mxu3 }
 0x31b   :  { %v225_v19 = vsel %vm124_vm1, %v222_v51, -inf }
 0x321   :  { %v549_v54 = vpop.f32.mrf.mxu0 }
 0x322   :  { %v552_v55 = vsel %vm124_vm1, %v549_v54, -inf  ;;  %v302_v57 = vpop.f32.mrf.mxu3 }
 0x323   :  { %553 = vmax.xlane.f32.xlu2 %v552_v55  ;;  %v305_v59 = vsel %vm124_vm1, %v302_v57, -inf }
 0x329   :  { %v708_v58 = vpop.f32.mrf.mxu0 }
 0x32a   :  { %v711_v60 = vsel %vm124_vm1, %v708_v58, -inf  ;;  %v473_v21 = vpop.f32.mrf.mxu3 }
 0x32b   :  { %306 = vmax.xlane.f32.xlu2 %v305_v59  ;;  %712 = vmax.xlane.f32.xlu0 %v711_v60  ;;  %v476_v22 = vsel %vm124_vm1, %v473_v21, -inf }
 0x332   :  { %v629_v23 = vpop.f32.mrf.mxu3 }
 0x333   :  { %391 = vadd.xlane.f32.xlu0 %v390_v62  ;;  %v632_v24 = vsel %vm124_vm1, %v629_v23, -inf }
 0x343   :  { %250 = vrot.lane.b32.xlu2 %v1281_v14, %s1205_s21 }
 0x396   :  { %v554_v63 = vpop.xlane.xlu2 %553 }
 0x397   :  { %v555_v6 = vsub.f32 %v549_v54, %v554_v63 }
 0x399   :  { %v556_v7 = vmul.f32 1.442695, %v555_v6 }
 0x39b   :  { %1085 = vpow2.f32 %v556_v7 }
 0x39e   :  { %v307_v8 = vpop.xlane.xlu2 %306  ;;  %v713_v10 = vpop.xlane.xlu0 %712 }
 0x39f   :  { %v714_v12 = vsub.f32 %v708_v58, %v713_v10  ;;  %v308_v25 = vsub.f32 %v302_v57, %v307_v8 }
 0x3a1   :  { %v1326_v13 = vpop.eup %1085  ;;  %v715_v15 = vmul.f32 1.442695, %v714_v12  ;;  %v309_v26 = vmul.f32 1.442695, %v308_v25 }
 0x3a2   :  { %v558_v16 = vsel %vm124_vm1, %v1326_v13, 0.0 }
 0x3a3   :  { %559 = vadd.xlane.f32.xlu1 %v558_v16  ;;  %1087 = vpow2.f32 %v715_v15 }
 0x3a4   :  { %1089 = vpow2.f32 %v309_v26 }
 0x3a6   :  { %v251_v17 = vpop.permute.xlu2 %250 }
 0x3a7   :  { %271 = vmatpush.msrb.mxu1 %v251_v17 }
 0x3a9   :  { %v1330_v18 = vpop.eup %1087 }
 0x3aa   :  { %v717_v20 = vsel %vm124_vm1, %v1330_v18, 0.0  ;;  %v1090_v27 = vpop.eup %1089 }
 0x3ab   :  { %226 = vmax.xlane.f32.xlu1 %v225_v19  ;;  %718 = vadd.xlane.f32.xlu0 %v717_v20  ;;  %v311_v28 = vsel %vm124_vm1, %v1090_v27, 0.0 }
 0x3b3   :  { %477 = vmax.xlane.f32.xlu1 %v476_v22 }
 0x3bb   :  { %633 = vmax.xlane.f32.xlu1 %v632_v24 }
 0x3d4   :  { %329 = vrot.lane.b32.xlu1 %v1281_v14, %s1210_s26 }
 0x3fe   :  { %312 = vadd.xlane.f32.xlu1 %v311_v28 }
 0x416   :  { %v1340_v29 = vpop.xlane.xlu1 %559 }
 0x417   :  { %656 = vrot.lane.b32.xlu1 %v118_v35, %s1210_s26 }
 0x41e   :  { %v227_v30 = vpop.xlane.xlu1 %226 }
 0x41f   :  { %v228_v31 = vsub.f32 %v222_v51, %v227_v30 }
 0x421   :  { %v229_v32 = vmul.f32 1.442695, %v228_v31 }
 0x423   :  { %1091 = vpow2.f32 %v229_v32 }
 0x426   :  { %v478_v33 = vpop.xlane.xlu1 %477 }
 0x427   :  { %v479_v34 = vsub.f32 %v473_v21, %v478_v33 }
 0x429   :  { %v1343_v36 = vpop.eup %1091  ;;  %v480_v37 = vmul.f32 1.442695, %v479_v34 }
 0x42a   :  { %v231_v38 = vsel %vm124_vm1, %v1343_v36, 0.0 }
 0x42b   :  { %1093 = vpow2.f32 %v480_v37  ;;  %232 = vadd.xlane.f32.xlu2 %v231_v38 }
 0x42e   :  { %v634_v39 = vpop.xlane.xlu1 %633 }
 0x42f   :  { %v635_v40 = vsub.f32 %v629_v23, %v634_v39 }
 0x431   :  { %v1347_v41 = vpop.eup %1093  ;;  %v636_v42 = vmul.f32 1.442695, %v635_v40 }
 0x432   :  { %v482_v43 = vsel %vm124_vm1, %v1347_v41, 0.0 }
 0x433   :  { %1095 = vpow2.f32 %v636_v42  ;;  %483 = vadd.xlane.f32.xlu2 %v482_v43 }
 0x439   :  { %v1351_v44 = vpop.eup %1095 }
 0x43a   :  { %v638_v46 = vsel %vm124_vm1, %v1351_v44, 0.0 }
 0x43b   :  { %639 = vadd.xlane.f32.xlu0 %v638_v46 }
 0x446   :  { %v330_v47 = vpop.permute.xlu1 %329 }
 0x447   :  { %350 = vmatpush.msra.mxu2 %v330_v47 }
 0x449   :  { %518 = vmatpush.msrb.mxu2 %v118_v35 }
 0x44b   :  { %577 = vrot.lane.b32.xlu2 %v118_v35, %s1205_s21 }
 0x44f   :  { %408 = vrot.lane.b32.xlu0 %v1281_v14, %s1211_s27  ;;  %v1361_v14 = vpop.xlane.xlu0 %391 }
 0x450   :  { %vm398_vm5 = vweird.f32 %v1361_v14 }
 0x453   :  { %735 = vrot.lane.b32.xlu2 %v118_v35, %s1211_s27 }
 0x457   :  { %v1364_v7 = vpop.xlane.xlu0 %718 }
 0x471   :  { %v313_v48 = vpop.xlane.xlu1 %312 }
 0x472   :  { %1097 = vrcp.f32 %v313_v48  ;;  %v325_v53 = vand.u32 2147483648, %v313_v48  ;;  %v323_v55 = vand.u32 2147483647, %v313_v48  ;;  %vm319_vm7 = vweird.f32 %v313_v48 }
 0x474   :  { %v326_v57 = vor.u32 1.1754944e-38, %v325_v53  ;;  %vm324_vm9 = vcmp.eq.f32.partialorder %v323_v55, 8.507059e+37 }
 0x478   :  { %v1098_v49 = vpop.eup %1097 }
 0x479   :  { %v315_v51 = vmul.f32 %v1098_v49, %v313_v48  ;;  %vm320_vm6 = vweird.f32 %v1098_v49 }
 0x47a   :  { %vm321_vm8 = vmor %vm319_vm7, %vm320_vm6 }
 0x47b   :  { %v316_v52 = vsub.f32 1.0, %v315_v51  ;;  %v404_v51 = vand.u32 2147483648, %v1361_v14 }
 0x47d   :  { %v317_v54 = vmul.f32 %v1098_v49, %v316_v52 }
 0x47f   :  { %v318_v56 = vadd.f32 %v1098_v49, %v317_v54  ;;  %v402_v54 = vand.u32 2147483647, %v1361_v14 }
 0x481   :  { %v322_v58 = vsel %vm321_vm8, %v1098_v49, %v318_v56 }
 0x482   :  { %v327_v59 = vsel %vm324_vm9, %v326_v57, %v322_v58  ;;  %vm403_vm9 = vcmp.eq.f32.partialorder %v402_v54, 8.507059e+37 }
 0x483   :  { %v1357_v60 = vmul.f32 %v1090_v27, %v327_v59 }
 0x485   :  { %1026 = vmatmul.msk.f32.vlgmr.msra.gmra.mxu2 %vm124_vm1, %v1357_v60 }
 0x489   :  { %v657_v63 = vpop.permute.xlu1 %656 }
 0x48a   :  { %677 = vmatpush.msra.mxu2 %v657_v63  ;;  %v405_v63 = vor.u32 1.1754944e-38, %v404_v51 }
 0x49e   :  { %v233_v62 = vpop.xlane.xlu2 %232 }
 0x49f   :  { %1099 = vrcp.f32 %v233_v62  ;;  %v245_v17 = vand.u32 2147483648, %v233_v62  ;;  %v243_v20 = vand.u32 2147483647, %v233_v62  ;;  %vm239_vm11 = vweird.f32 %v233_v62 }
 0x4a0   :  { %1101 = vrcp.f32 %v1361_v14 }
 0x4a1   :  { %v246_v23 = vor.u32 1.1754944e-38, %v245_v17  ;;  %vm244_vm13 = vcmp.eq.f32.partialorder %v243_v20, 8.507059e+37 }
 0x4a5   :  { %v1100_v6 = vpop.eup %1099 }
 0x4a6   :  { %v235_v8 = vmul.f32 %v1100_v6, %v233_v62  ;;  %v484_v10 = vpop.xlane.xlu2 %483  ;;  %v1366_v12 = vpop.eup %1101  ;;  %vm240_vm10 = vweird.f32 %v1100_v6 }
 0x4a7   :  { %1103 = vrcp.f32 %v484_v10  ;;  %v394_v19 = vmul.f32 %v1366_v12, %v1361_v14  ;;  %vm241_vm12 = vmor %vm239_vm11, %vm240_vm10  ;;  %v496_v32 = vand.u32 2147483648, %v484_v10  ;;  %v494_v35 = vand.u32 2147483647, %v484_v10 }
 0x4a8   :  { %v236_v15 = vsub.f32 1.0, %v235_v8  ;;  %1105 = vrcp.f32 %v1340_v29  ;;  %vm490_vm15 = vweird.f32 %v484_v10  ;;  %vm399_vm4 = vweird.f32 %v1366_v12 }
 0x4a9   :  { %v395_v27 = vsub.f32 1.0, %v394_v19  ;;  %v497_v42 = vor.u32 1.1754944e-38, %v496_v32  ;;  %vm495_vm3 = vcmp.eq.f32.partialorder %v494_v35, 8.507059e+37  ;;  %vm1390_vm6 = vmor %vm398_vm5, %vm399_vm4 }
 0x4aa   :  { %v237_v16 = vmul.f32 %v1100_v6, %v236_v15 }
 0x4ab   :  { %v396_v37 = vmul.f32 %v1366_v12, %v395_v27 }
 0x4ac   :  { %v238_v21 = vadd.f32 %v1100_v6, %v237_v16 }
 0x4ad   :  { %v1104_v22 = vpop.eup %1103  ;;  %v397_v46 = vadd.f32 %v1366_v12, %v396_v37 }
 0x4ae   :  { %v486_v24 = vmul.f32 %v1104_v22, %v484_v10  ;;  %v640_v25 = vpop.xlane.xlu0 %639  ;;  %v242_v26 = vsel %vm241_vm12, %v1100_v6, %v238_v21  ;;  %v1371_v28 = vpop.eup %1105  ;;  %vm491_vm14 = vweird.f32 %v1104_v22  ;;  %v570_v21 = vand.u32 2147483647, %v1340_v29 }
 0x4af   :  { %1107 = vrcp.f32 %v640_v25  ;;  %v247_v31 = vsel %vm244_vm13, %v246_v23, %v242_v26  ;;  %v562_v38 = vmul.f32 %v1371_v28, %v1340_v29  ;;  %vm492_vm2 = vmor %vm490_vm15, %vm491_vm14  ;;  %v652_v55 = vand.u32 2147483648, %v640_v25  ;;  %v578_v59 = vpop.permute.xlu2 %577 }
 0x4b0   :  { %v487_v30 = vsub.f32 1.0, %v486_v24  ;;  %v1374_v33 = vmul.f32 %v1343_v36, %v247_v31  ;;  %1109 = vrcp.f32 %v1364_v7  ;;  %v650_v58 = vand.u32 2147483647, %v640_v25 }
 0x4b1   :  { %v563_v47 = vsub.f32 1.0, %v562_v38  ;;  %vm646_vm8 = vweird.f32 %v640_v25  ;;  %v653_v8 = vor.u32 1.1754944e-38, %v652_v55  ;;  %vm567_vm12 = vweird.f32 %v1371_v28 }
 0x4b2   :  { %v488_v34 = vmul.f32 %v1104_v22, %v487_v30  ;;  %1023 = vmatmul.msk.f32.vlgmr.msrb.gmra.mxu1 %vm124_vm1, %v1374_v33  ;;  %vm651_vm11 = vcmp.eq.f32.partialorder %v650_v58, 8.507059e+37  ;;  %vm566_vm13 = vweird.f32 %v1340_v29  ;;  %vm571_vm15 = vcmp.eq.f32.partialorder %v570_v21, 8.507059e+37 }
 0x4b3   :  { %v564_v62 = vmul.f32 %v1371_v28, %v563_v47  ;;  %vm568_vm14 = vmor %vm566_vm13, %vm567_vm12  ;;  %v729_v30 = vand.u32 2147483647, %v1364_v7  ;;  %v196_v38 = vadd.f32 %v1315_v50, %v1258_v9  ;;  %v1073_v9 = vld [vmem:[#allocation5 + $0x43] ss:$0 sm:$0xff] }
 0x4b4   :  { %v489_v39 = vadd.f32 %v1104_v22, %v488_v34 }
 0x4b5   :  { %v1108_v40 = vpop.eup %1107  ;;  %v565_v16 = vadd.f32 %v1371_v28, %v564_v62  ;;  %vm730_vm5 = vcmp.eq.f32.partialorder %v729_v30, 8.507059e+37 }
 0x4b6   :  { %v642_v36 = vmul.f32 %v1108_v40, %v640_v25  ;;  %v493_v43 = vsel %vm492_vm2, %v1104_v22, %v489_v39  ;;  %v1110_v49 = vpop.eup %1109  ;;  %vm647_vm7 = vweird.f32 %v1108_v40 }
 0x4b7   :  { %v498_v48 = vsel %vm495_vm3, %v497_v42, %v493_v43  ;;  %v721_v14 = vmul.f32 %v1110_v49, %v1364_v7  ;;  %vm648_vm10 = vmor %vm646_vm8, %vm647_vm7  ;;  %v569_v24 = vsel %vm568_vm14, %v1371_v28, %v565_v16  ;;  %vm726_vm2 = vweird.f32 %v1110_v49 }
 0x4b8   :  { %v643_v52 = vsub.f32 1.0, %v642_v36  ;;  %v1386_v53 = vmul.f32 %v1347_v41, %v498_v48  ;;  %v401_v41 = vsel %vm1390_vm6, %v1366_v12, %v397_v46  ;;  %v572_v12 = vand.u32 2147483648, %v1340_v29 }
 0x4b9   :  { %v406_v10 = vsel %vm403_vm9, %v405_v63, %v401_v41  ;;  %v722_v17 = vsub.f32 1.0, %v721_v14  ;;  %vm725_vm3 = vweird.f32 %v1364_v7  ;;  %vm445_vm7 = vcmask 130048  }
 0x4ba   :  { %v644_v57 = vmul.f32 %v1108_v40, %v643_v52  ;;  %1032 = vmatmul.msk.f32.vlgmr.msrb.gmra.mxu2 %vm124_vm1, %v1386_v53  ;;  %v1408_v23 = vmul.f32 %v1320_v61, %v406_v10  ;;  %v573_v26 = vor.u32 1.1754944e-38, %v572_v12  ;;  %v731_v61 = vand.u32 2147483648, %v1364_v7  ;;  %vm727_vm4 = vmor %vm725_vm3, %vm726_vm2  ;;  %v1074_v10 = vld [vmem:[#allocation5 + $0x42] ss:$0 sm:$0xff] }
 0x4bb   :  { %v723_v25 = vmul.f32 %v1110_v49, %v722_v17  ;;  %vm447_vm8 = vcmask 195584   ;;  %vm900_vm2 = vcmask 523264  }
 0x4bc   :  { %v645_v6 = vadd.f32 %v1108_v40, %v644_v57  ;;  %v574_v29 = vsel %vm571_vm15, %v573_v26, %v569_v24  ;;  %v732_v32 = vor.u32 1.1754944e-38, %v731_v61 }
 0x4bd   :  { %v724_v27 = vadd.f32 %v1110_v49, %v723_v25  ;;  %v575_v28 = vmul.f32 %v1326_v13, %v574_v29 }
 0x4be   :  { %v649_v15 = vsel %vm648_vm10, %v1108_v40, %v645_v6 }
 0x4bf   :  { %v654_v19 = vsel %vm651_vm11, %v653_v8, %v649_v15  ;;  %v728_v31 = vsel %vm727_vm4, %v1110_v49, %v724_v27  ;;  %v1075_v15 = vld [vmem:[#allocation5 + $0x41] ss:$0 sm:$0xff] }
 0x4c0   :  { %v655_v20 = vmul.f32 %v1351_v44, %v654_v19  ;;  %v736_v44 = vpop.permute.xlu2 %735  ;;  %v733_v34 = vsel %vm730_vm5, %v732_v32, %v728_v31  ;;  %v61_v32 = vld [vmem:[#allocation5 + $0x78] sm:$0xff] }
 0x4c1   :  { %v409_v22 = vpop.permute.xlu0 %408  ;;  %v734_v35 = vmul.f32 %v1330_v18, %v733_v34  ;;  %v60_v34 = vld [vmem:[#allocation5 + $0x70] sm:$0xff]  ;;  %915 = vmatpush.msrb.mxu2 %v61_v32 }
 0x4c2   :  { %429 = vmatpush.msra.mxu1 %v409_v22  ;;  %1038 = vmatmul.msk.f32.vlgmr.msra.gmra.mxu2 %vm124_vm1, %v655_v20 }
 0x4c3   :  { %1029 = vmatmul.msk.f32.vlgmr.msra.gmra.mxu1 %vm124_vm1, %v1408_v23  ;;  %916 = vmatpush.msrb.mxu2 %v60_v34 }
 0x4c4   :  { %598 = vmatpush.msrb.mxu1 %v578_v59 }
 0x4c6   :  { %756 = vmatpush.msra.mxu1 %v736_v44 }
 0x4cb   :  { %1035 = vmatmul.msk.f32.vlgmr.msrb.gmra.mxu1 %vm124_vm1, %v575_v28 }
 0x4d3   :  { %1041 = vmatmul.msk.f32.vlgmr.msra.gmra.mxu1 %vm124_vm1, %v734_v35 }
 0x508   :  { %v352_v40 = vpop.f32.mrf.mxu2 }
 0x52f   :  { %v273_v37 = vpop.f32.mrf.mxu1 }
 0x530   :  { %v276_v39 = vadd.f32 %v273_v37, %v196_v38  ;;  %v59_v37 = vld [vmem:[#allocation5 + $0x68] sm:$0xff]  ;;  %v58_v38 = vld [vmem:[#allocation5 + $0x60] sm:$0xff] }
 0x531   :  { %917 = vmatpush.msrb.mxu2 %v59_v37 }
 0x532   :  { %v355_v7 = vadd.f32 %v352_v40, %v276_v39 }
 0x533   :  { %918 = vmatpush.msrb.mxu2 %v58_v38 }
 0x53d   :  { %v520_v43 = vpop.f32.mrf.mxu2 }
 0x53e   :  { %v523_v47 = vadd.f32 %v520_v43, %v1265_v11  ;;  %v1214_v11 = vmov 32.0  }
 0x53f   :  { %1111 = vrcp.f32 %v1214_v11 }
 0x540   :  { %v431_v42 = vpop.f32.mrf.mxu1 }
 0x541   :  { %v434_v13 = vadd.f32 %v431_v42, %v355_v7  ;;  %v57_v42 = vld [vmem:[#allocation5 + $0x58] sm:$0xff] }
 0x542   :  { %919 = vmatpush.msrb.mxu2 %v57_v42 }
 0x543   :  { %v774_v36 = vsel %vm68_vm0, %v434_v13, 0.0 }
 0x544   :  { %775 = vadd.xlane.f32.xlu0 %v774_v36 }
 0x545   :  { %v679_v18 = vpop.f32.mrf.mxu2  ;;  %v1112_v50 = vpop.eup %1111 }
 0x546   :  { %v781_v55 = vmul.f32 32.0, %v1112_v50  ;;  %vm785_vm6 = vweird.f32 %v1112_v50 }
 0x548   :  { %v600_v46 = vpop.f32.mrf.mxu1  ;;  %v782_v0 = vsub.f32 1.0, %v781_v55 }
 0x549   :  { %v603_v48 = vadd.f32 %v600_v46, %v523_v47 }
 0x54a   :  { %v783_v1 = vmul.f32 %v1112_v50, %v782_v0 }
 0x54b   :  { %v682_v49 = vadd.f32 %v679_v18, %v603_v48 }
 0x550   :  { %v758_v51 = vpop.f32.mrf.mxu1 }
 0x551   :  { %v761_v52 = vadd.f32 %v758_v51, %v682_v49 }
 0x553   :  { %v777_v54 = vsel %vm68_vm0, %v761_v52, 0.0 }
 0x554   :  { %778 = vadd.xlane.f32.xlu1 %v777_v54 }
 0x56d   :  { %1064 = vrot.lane.b32.xlu1 %v1063_v2, %s1210_s26  ;;  %v784_v2 = vadd.f32 %v1112_v50, %v783_v1 }
 0x56f   :  { %v1436_v56 = vsel %vm785_vm6, %v1112_v50, %v784_v2 }
 0x575   :  { %834 = vrot.lane.b32.xlu1 %v1073_v9, %s1205_s21 }
 0x57d   :  { %435 = vrot.lane.b32.xlu1 %v1374_v33, %s1201_s18 }
 0x585   :  { %762 = vrot.lane.b32.xlu1 %v575_v28, %s1201_s18 }
 0x58d   :  { %765 = vrot.lane.b32.xlu1 %v655_v20, %s1212_s28  ;;  %v1076_v20 = vld [vmem:[#allocation5 + $0x40] ss:$0 sm:$0xff] }
 0x595   :  { %768 = vrot.lane.b32.xlu1 %v734_v35, %s1213_s29 }
 0x5b7   :  { %v776_v57 = vpop.xlane.xlu0 %775 }
 0x5b8   :  { %v787_v33 = vmul.f32 %v1436_v56, %v776_v57 }
 0x5ba   :  { %v1439_v58 = vsub.f32 %v434_v13, %v787_v33 }
 0x5bc   :  { %v791_v59 = vmul.f32 %v1439_v58, %v1439_v58 }
 0x5be   :  { %v793_v41 = vsel %vm68_vm0, %v791_v59, 0.0 }
 0x5bf   :  { %794 = vadd.xlane.f32.xlu2 %v793_v41  ;;  %v56_v41 = vld [vmem:[#allocation5 + $0x50] sm:$0xff] }
 0x5c0   :  { %920 = vmatpush.msrb.mxu2 %v56_v41 }
 0x5c7   :  { %v779_v62 = vpop.xlane.xlu1 %778 }
 0x5c8   :  { %v788_v14 = vmul.f32 %v1436_v56, %v779_v62  ;;  %v55_v62 = vld [vmem:[#allocation5 + $0x48] sm:$0xff] }
 0x5c9   :  { %921 = vmatpush.msrb.mxu2 %v55_v62 }
 0x5ca   :  { %v1445_v63 = vsub.f32 %v761_v52, %v788_v14  ;;  %v54_v14 = vld [vmem:[#allocation5 + $0x40] sm:$0xff] }
 0x5cb   :  { %922 = vmatpush.msrb.mxu2 %v54_v14 }
 0x5cc   :  { %v792_v6 = vmul.f32 %v1445_v63, %v1445_v63 }
 0x5ce   :  { %v796_v8 = vsel %vm68_vm0, %v792_v6, 0.0 }
 0x5cf   :  { %797 = vadd.xlane.f32.xlu0 %v796_v8 }
 0x5d7   :  { %827 = vrot.lane.b32.xlu2 %v1074_v10, %s1205_s21 }
 0x5df   :  { %v1065_v16 = vpop.permute.xlu1 %1064  ;;  %897 = vrot.lane.b32.xlu2 %v1075_v15, %s1205_s21 }
 0x5e0   :  { %v1067_v17 = vunpack.i.h.bf16 %v1065_v16  ;;  %v1066_v19 = vunpack.i.l.bf16 %v1065_v16 }
 0x5e2   :  { %878 = vmatpush.msrb.mxu3 %v1066_v19 }
 0x5e3   :  { %1069 = vrot.lane.b32.xlu0 %v1068_v5, %s1210_s26 }
 0x5e4   :  { %879 = vmatpush.msrb.mxu3 %v1067_v17 }
 0x5e7   :  { %v1456_v12 = vpop.permute.xlu1 %834  ;;  %441 = vrot.lane.b32.xlu2 %v1408_v23, %s1213_s29 }
 0x5eb   :  { %857 = vrot.lane.b32.xlu0 %v1076_v20, %s1205_s21 }
 0x5ef   :  { %v1461_v21 = vpop.permute.xlu1 %435 }
 0x5f0   :  { %v444_v2 = vsel %vm124_vm1, %v1301_v45, %v1461_v21 }
 0x5f3   :  { %438 = vrot.lane.b32.xlu0 %v1357_v60, %s1212_s28 }
 0x5f7   :  { %v763_v22 = vpop.permute.xlu1 %762 }
 0x5f8   :  { %v771_v3 = vsel %vm124_vm1, %v1386_v53, %v763_v22 }
 0x5ff   :  { %v766_v24 = vpop.permute.xlu1 %765 }
 0x600   :  { %v772_v4 = vsel %vm445_vm7, %v771_v3, %v766_v24 }
 0x607   :  { %v769_v5 = vpop.permute.xlu1 %768 }
 0x608   :  { %v773_v23 = vsel %vm447_vm8, %v772_v4, %v769_v5  ;;  %v1077_v5 = vld [vmem:[#allocation5 + $0x44] ss:$0 sm:$0xff] }
 0x609   :  { %993 = vst.msk [vmem:[#allocation7 + $0x18] sm:$0xff] %vm68_vm0, %v773_v23 }
 0x632   :  { %v795_v25 = vpop.xlane.xlu2 %794 }
 0x633   :  { %v799_v26 = vmul.f32 %v795_v25, %v1436_v56 }
 0x635   :  { %v801_v44 = vadd.f32 1e-06, %v799_v26 }
 0x637   :  { %1113 = vrsqrt.f32 %v801_v44  ;;  %vm809_vm10 = vweird.f32 %v801_v44 }
 0x63a   :  { %v828_v43 = vpop.permute.xlu2 %827 }
 0x63d   :  { %v1114_v60 = vpop.eup %1113 }
 0x63e   :  { %v804_v29 = vmul.f32 %v1114_v60, %v801_v44  ;;  %vm810_vm9 = vweird.f32 %v1114_v60 }
 0x63f   :  { %vm811_vm11 = vmor %vm809_vm10, %vm810_vm9 }
 0x640   :  { %v805_v27 = vmul.f32 %v1114_v60, %v804_v29 }
 0x642   :  { %v806_v61 = vmul.f32 0.5, %v805_v27  ;;  %v798_v30 = vpop.xlane.xlu0 %797  ;;  %v898_v50 = vpop.permute.xlu2 %897 }
 0x643   :  { %v800_v28 = vmul.f32 %v798_v30, %v1436_v56 }
 0x644   :  { %v807_v31 = vsub.f32 1.5, %v806_v61 }
 0x645   :  { %v802_v53 = vadd.f32 1e-06, %v800_v28 }
 0x646   :  { %v808_v35 = vmul.f32 %v1114_v60, %v807_v31 }
 0x647   :  { %1115 = vrsqrt.f32 %v802_v53  ;;  %vm819_vm13 = vweird.f32 %v802_v53 }
 0x648   :  { %v812_v40 = vsel %vm811_vm11, %v1114_v60, %v808_v35 }
 0x649   :  { %v823_v36 = vmul.f32 %v812_v40, %v1439_v58 }
 0x64a   :  { %v442_v33 = vpop.permute.xlu2 %441 }
 0x64b   :  { %v830_v48 = vmul.f32 %v828_v43, %v823_v36 }
 0x64d   :  { %v1116_v39 = vpop.eup %1115  ;;  %v837_v9 = vadd.f32 %v1456_v12, %v830_v48 }
 0x64e   :  { %v814_v7 = vmul.f32 %v1116_v39, %v802_v53  ;;  %vm820_vm12 = vweird.f32 %v1116_v39  ;;  %v1078_v53 = vld [vmem:[#allocation5 + $0x45] ss:$0 sm:$0xff] }
 0x64f   :  { %vm821_vm14 = vmor %vm819_vm13, %vm820_vm12 }
 0x650   :  { %v815_v13 = vmul.f32 %v1116_v39, %v814_v7 }
 0x652   :  { %v816_v46 = vmul.f32 0.5, %v815_v13 }
 0x654   :  { %v817_v47 = vsub.f32 1.5, %v816_v46 }
 0x655   :  { %v1070_v18 = vpop.permute.xlu0 %1069 }
 0x656   :  { %v818_v49 = vmul.f32 %v1116_v39, %v817_v47  ;;  %v1071_v51 = vunpack.i.l.bf16 %v1070_v18  ;;  %v1072_v54 = vunpack.i.h.bf16 %v1070_v18 }
 0x658   :  { %v822_v52 = vsel %vm821_vm14, %v1116_v39, %v818_v49  ;;  %880 = vmatpush.msrb.mxu3 %v1071_v51 }
 0x659   :  { %v824_v11 = vmul.f32 %v822_v52, %v1445_v63 }
 0x65a   :  { %881 = vmatpush.msrb.mxu3 %v1072_v54 }
 0x65b   :  { %1042 = vmatmul.msk.f32.vlgmr.msrb.gmra.mxu3 %vm68_vm0, %v837_v9  ;;  %v831_v0 = vmul.f32 %v828_v43, %v824_v11 }
 0x65d   :  { %v858_v55 = vpop.permute.xlu0 %857  ;;  %v838_v1 = vadd.f32 %v1456_v12, %v831_v0 }
 0x663   :  { %1043 = vmatmul.msk.f32.gmra.mxu3 %vm68_vm0, %v838_v1 }
 0x665   :  { %v439_v57 = vpop.permute.xlu0 %438 }
 0x666   :  { %v446_v58 = vsel %vm445_vm7, %v444_v2, %v439_v57 }
 0x667   :  { %v448_v59 = vsel %vm447_vm8, %v446_v58, %v442_v33 }
 0x668   :  { %992 = vst.msk [vmem:[#allocation7 + $0x10] sm:$0xff] %vm68_vm0, %v448_v59 }
 0x6de   :  { %v883_v63 = vpop.f32.mrf.mxu3 }
 0x6df   :  { %v884_v6 = vadd.f32 %v883_v63, %v858_v55 }
 0x6e1   :  { %vm889_vm15 = vcmp.ge.f32.partialorder %v884_v6, 0.0  ;;  %v891_v8 = vmul.f32 0.01, %v884_v6 }
 0x6e3   :  { %v893_v45 = vsel %vm889_vm15, %v884_v6, %v891_v8 }
 0x6e4   :  { %1044 = vmatmul.msk.f32.vlgmr.msrb.gmra.mxu2 %vm900_vm2, %v893_v45 }
 0x6e6   :  { %v886_v10 = vpop.f32.mrf.mxu3 }
 0x6e7   :  { %v887_v15 = vadd.f32 %v886_v10, %v858_v55 }
 0x6e9   :  { %v892_v16 = vmul.f32 0.01, %v887_v15  ;;  %vm890_vm1 = vcmp.ge.f32.partialorder %v887_v15, 0.0 }
 0x6eb   :  { %v894_v17 = vsel %vm890_vm1, %v887_v15, %v892_v16 }
 0x6ec   :  { %1045 = vmatmul.msk.f32.gmra.mxu2 %vm900_vm2, %v894_v17 }
 0x767   :  { %v924_v19 = vpop.f32.mrf.mxu2 }
 0x768   :  { %v925_v12 = vadd.f32 %v924_v19, %v898_v50 }
 0x76a   :  { %v930_v20 = vadd.f32 %v925_v12, %v837_v9 }
 0x76c   :  { %v932_v21 = vsel %vm68_vm0, %v930_v20, 0.0 }
 0x76d   :  { %933 = vadd.xlane.f32.xlu0 %v932_v21 }
 0x76f   :  { %v927_v22 = vpop.f32.mrf.mxu2 }
 0x770   :  { %v928_v24 = vadd.f32 %v927_v22, %v898_v50 }
 0x772   :  { %v931_v3 = vadd.f32 %v928_v24, %v838_v1 }
 0x774   :  { %v935_v4 = vsel %vm68_vm0, %v931_v3, 0.0 }
 0x775   :  { %936 = vadd.xlane.f32.xlu2 %v935_v4 }
 0x781   :  { %978 = vrot.lane.b32.xlu0 %v1077_v5, %s1205_s21 }
 0x7e0   :  { %v934_v23 = vpop.xlane.xlu0 %933 }
 0x7e1   :  { %v938_v25 = vmul.f32 %v934_v23, %v1436_v56 }
 0x7e3   :  { %v940_v26 = vsub.f32 %v930_v20, %v938_v25 }
 0x7e5   :  { %v942_v44 = vmul.f32 %v940_v26, %v940_v26 }
 0x7e7   :  { %v944_v60 = vsel %vm68_vm0, %v942_v44, 0.0 }
 0x7e8   :  { %v937_v29 = vpop.xlane.xlu2 %936  ;;  %945 = vadd.xlane.f32.xlu1 %v944_v60 }
 0x7e9   :  { %v939_v27 = vmul.f32 %v937_v29, %v1436_v56 }
 0x7eb   :  { %v941_v61 = vsub.f32 %v931_v3, %v939_v27 }
 0x7ed   :  { %v943_v30 = vmul.f32 %v941_v61, %v941_v61 }
 0x7ef   :  { %v947_v28 = vsel %vm68_vm0, %v943_v30, 0.0 }
 0x7f0   :  { %948 = vadd.xlane.f32.xlu2 %v947_v28 }
 0x7f3   :  { %v979_v18 = vpop.permute.xlu0 %978 }
 0x808   :  { %985 = vrot.lane.b32.xlu2 %v1078_v53, %s1205_s21 }
 0x85b   :  { %v946_v31 = vpop.xlane.xlu1 %945 }
 0x85c   :  { %v950_v32 = vmul.f32 %v946_v31, %v1436_v56 }
 0x85e   :  { %v952_v34 = vadd.f32 1e-06, %v950_v32 }
 0x860   :  { %1117 = vrsqrt.f32 %v952_v34  ;;  %vm960_vm4 = vweird.f32 %v952_v34 }
 0x863   :  { %v949_v35 = vpop.xlane.xlu2 %948 }
 0x864   :  { %v951_v37 = vmul.f32 %v949_v35, %v1436_v56 }
 0x866   :  { %v1118_v38 = vpop.eup %1117  ;;  %v953_v39 = vadd.f32 1e-06, %v951_v37 }
 0x867   :  { %v955_v40 = vmul.f32 %v1118_v38, %v952_v34  ;;  %vm961_vm3 = vweird.f32 %v1118_v38 }
 0x868   :  { %1119 = vrsqrt.f32 %v953_v39  ;;  %vm962_vm5 = vmor %vm960_vm4, %vm961_vm3  ;;  %vm970_vm7 = vweird.f32 %v953_v39 }
 0x869   :  { %v956_v7 = vmul.f32 %v1118_v38, %v955_v40 }
 0x86b   :  { %v957_v42 = vmul.f32 0.5, %v956_v7  ;;  %v986_v52 = vpop.permute.xlu2 %985 }
 0x86d   :  { %v958_v13 = vsub.f32 1.5, %v957_v42 }
 0x86e   :  { %v1120_v36 = vpop.eup %1119 }
 0x86f   :  { %v965_v43 = vmul.f32 %v1120_v36, %v953_v39  ;;  %v959_v46 = vmul.f32 %v1118_v38, %v958_v13  ;;  %vm971_vm6 = vweird.f32 %v1120_v36 }
 0x870   :  { %vm972_vm8 = vmor %vm970_vm7, %vm971_vm6 }
 0x871   :  { %v966_v47 = vmul.f32 %v1120_v36, %v965_v43  ;;  %v963_v48 = vsel %vm962_vm5, %v1118_v38, %v959_v46 }
 0x872   :  { %v974_v49 = vmul.f32 %v963_v48, %v940_v26 }
 0x873   :  { %v967_v51 = vmul.f32 0.5, %v966_v47 }
 0x874   :  { %v981_v56 = vmul.f32 %v979_v18, %v974_v49 }
 0x875   :  { %v968_v54 = vsub.f32 1.5, %v967_v51 }
 0x876   :  { %v988_v9 = vadd.f32 %v986_v52, %v981_v56 }
 0x877   :  { %v969_v11 = vmul.f32 %v1120_v36, %v968_v54 }
 0x878   :  { %990 = vst.msk [vmem:[#allocation7] sm:$0xff] %vm68_vm0, %v988_v9 }
 0x879   :  { %v973_v50 = vsel %vm972_vm8, %v1120_v36, %v969_v11 }
 0x87a   :  { %v975_v55 = vmul.f32 %v973_v50, %v941_v61 }
 0x87c   :  { %v982_v0 = vmul.f32 %v979_v18, %v975_v55 }
 0x87e   :  { %v989_v1 = vadd.f32 %v986_v52, %v982_v0 }
 0x880   :  { %991 = vst.msk [vmem:[#allocation7 + $0x8] sm:$0xff] %vm68_vm0, %v989_v1 }
 0x881   :  { %1006 = dma.vmem_to_hbm [thread:$0]  %s999_s3, 512, %s1001_s6, [#allocation4], %s1200_s17, %s1200_s17, %s1201_s18  }
 0x882   :  { %1197 = dma.done.wait [#allocation4], 512  }
 0x883   :  { %1198 = vsyncadd [#allocation4], 4294966784 }
 0x884   :  { %1011 = vsyncpa [#allocation3], 1 }
 0x885   :  { %1012 = vsyncpa [#allocation6], 1 }
 0x886   :  { %1013 = vsyncpa [#allocation4], 1 }

</bundles_post_ra>
